<compile_context>
chip_gen: v6e
topology: v6e:2x2x1
jax: 0.10.0
libtpu: 0.0.40
codegen_flags: <defaults>
</compile_context>

<pallas_src>
import functools
import math

import jax
import jax.numpy as jnp
from jax.experimental import pallas as pl
from jax.experimental.pallas import tpu as pltpu


# ---------------------------------------------------------------------------
# Hardware-derived sizing (queried lazily, at trace time)
# ---------------------------------------------------------------------------
def _vmem_capacity_bytes():
    try:
        # Per-TensorCore VMEM: 128 MiB on v5e/v6e, 64 MiB on v7x.
        return int(pltpu.get_tpu_info().vmem_capacity_bytes)
    except Exception:
        return 64 * 1024 * 1024  # conservative fallback (v7x per-TC figure)


def _compiler_params(semantics, vmem_cap):
    return pltpu.CompilerParams(
        dimension_semantics=semantics,
        vmem_limit_bytes=vmem_cap // 2,  # headroom for Mosaic internal scratch
    )


def _round_up(n, m):
    return -(-n // m) * m


def _pack_factor(F, M):
    """Fold k rows into the lane axis so k*F is a multiple of 128 (lane-dense
    loads/stores).  Falls back to k=1 when the row count is not divisible."""
    if F % 128 == 0:
        return 1
    k = 128 // math.gcd(F, 128)
    if k > 1 and M % k == 0:
        return k
    return 1  # fallback: unpacked (masked partial stores if F % 128 != 0)


def _choose_tile_f(Fp):
    """Lane-axis tile: split very wide feature axes into 128-multiple chunks
    instead of shrinking the row tile to fit VMEM."""
    MAX_TILE_F = 4096
    if Fp <= MAX_TILE_F or Fp % 128 != 0:
        return Fp
    return MAX_TILE_F


def _choose_tile_m(mp_rows, tile_f, vmem_cap):
    """Largest row tile with <= ~VMEM/16 bytes per buffer, budgeted at
    4 B/elem (the f32 working set).  VMEM/16 = 8 MiB on v5e/v6e, 4 MiB on
    v7x; with double-buffered in+out streams that stays well under the
    vmem_limit on every generation."""
    per_buffer = max(vmem_cap // 16, 1 << 20)
    tile = per_buffer // (tile_f * 4)
    tile = max(8, (tile // 8) * 8)
    tile = min(tile, _round_up(max(mp_rows, 1), 8))
    return tile


# ---------------------------------------------------------------------------
# Kernel 1: masked shifted-sum reduction for the data-dependent init
#   accumulates sum(x - shift) and sum((x - shift)^2) per packed lane column.
#   Grid: (core_slot, lane_block, row_block); row axis is the reduction.
# ---------------------------------------------------------------------------
def _make_init_sums_kernel(tile_m, valid_rows, blocks_per_core):
    def kernel(x_ref, shift_ref, sum_ref, sumsq_ref):
        c = pl.program_id(0)
        i = pl.program_id(2)

        @pl.when(i == 0)
        def _():
            sum_ref[...] = jnp.zeros_like(sum_ref)
            sumsq_ref[...] = jnp.zeros_like(sumsq_ref)

        # Logical start row of this block; rows at/after `valid_rows`
        # (partial tail block, or a fully out-of-range block of the second
        # core slot) are masked to zero so they contribute nothing.
        start = (c * blocks_per_core + i) * tile_m
        n_valid = valid_rows - start

        xb = x_ref[...].astype(jnp.float32) - shift_ref[...]
        row_ids = jax.lax.broadcasted_iota(jnp.int32, xb.shape, 0)
        xb = jnp.where(row_ids < n_valid, xb, 0.0)

        # (1, tile_f) partial sums broadcast into all 8 sublanes of the
        # accumulator block; the wrapper reads one sublane per core slot.
        sum_ref[...] += jnp.sum(xb, axis=0, keepdims=True)
        sumsq_ref[...] += jnp.sum(xb * xb, axis=0, keepdims=True)

    return kernel


# ---------------------------------------------------------------------------
# Kernel 2: forward hot path   y = (x + bias) * softplus(weight)
#   softplus + parameter packing precomputed in the wrapper; OOB rows/lanes of
#   the partial last block compute garbage that is discarded on write-out.
# ---------------------------------------------------------------------------
def _forward_kernel(x_ref, b_ref, s_ref, y_ref):
    xc = x_ref[...].astype(b_ref.dtype)      # no-op when dtypes already match
    y_ref[...] = ((xc + b_ref[...]) * s_ref[...]).astype(y_ref.dtype)


# ---------------------------------------------------------------------------
# Wrappers
# ---------------------------------------------------------------------------
@functools.partial(jax.jit, static_argnames=("init_scale", "tile_m"))
def actnorm_init_params(x, *, init_scale=1.0, tile_m=None):
    """Data-dependent ActNorm init. Returns (weight, bias), each shape (F,)."""
    F = x.shape[-1]
    x2d = x.reshape(-1, F)                   # free (metadata-only) reshape
    M = x2d.shape[0]

    k = _pack_factor(F, M)
    Mp, Fp = M // k, k * F
    xp = x2d.reshape(Mp, Fp)                 # free reshape: lane-dense packing

    vmem_cap = _vmem_capacity_bytes()
    tile_f = _choose_tile_f(Fp)
    tm = tile_m if tile_m is not None else _choose_tile_m(Mp, tile_f, vmem_cap)

    row_blocks = pl.cdiv(Mp, tm)
    lane_blocks = pl.cdiv(Fp, tile_f)
    bpc = pl.cdiv(row_blocks, 2)             # row blocks per core slot

    def x_map(c, j, i):
        # Clamp so an overhanging block never indexes past the array; the
        # kernel masks it out based on the *logical* (unclamped) start row.
        return (jnp.minimum(c * bpc + i, row_blocks - 1), j)

    sums_call = pl.pallas_call(
        _make_init_sums_kernel(tm, Mp, bpc),
        out_shape=(jax.ShapeDtypeStruct((16, Fp), jnp.float32),
                   jax.ShapeDtypeStruct((16, Fp), jnp.float32)),
        grid_spec=pltpu.PrefetchScalarGridSpec(
            num_scalar_prefetch=0,
            grid=(2, lane_blocks, bpc),
            in_specs=[pl.BlockSpec((tm, tile_f), x_map),
                      pl.BlockSpec((1, tile_f), lambda c, j, i: (0, j))],
            out_specs=[pl.BlockSpec((8, tile_f), lambda c, j, i: (c, j)),
                       pl.BlockSpec((8, tile_f), lambda c, j, i: (c, j))],
        ),
        compiler_params=_compiler_params(
            ("parallel", "parallel", "arbitrary"), vmem_cap),
        cost_estimate=pl.CostEstimate(
            flops=4 * Mp * Fp, transcendentals=0,
            bytes_accessed=Mp * Fp * x.dtype.itemsize + 32 * Fp * 4 + 4 * Fp),
    )

    def fold(acc):                            # (16, Fp) f32 -> (F,) f32
        per_core = acc.reshape(2, 8, Fp)[:, 0, :]   # one sublane per core slot
        v = per_core.sum(axis=0)
        return v.reshape(k, F).sum(axis=0) if k > 1 else v

    inv_n = 1.0 / float(M)

    # Pass 1: mean.
    zero_shift = jnp.zeros((1, Fp), jnp.float32)
    psum, _ = sums_call(xp, zero_shift)
    mean = fold(psum) * inv_n

    # Pass 2: centered second moment — matches the two-pass reference exactly
    # (init runs once; the extra HBM pass over x is cheap).
    if k > 1:
        mean_shift = jnp.tile(mean, k).reshape(1, Fp)
    else:
        mean_shift = mean.reshape(1, Fp)
    _, psumsq = sums_call(xp, mean_shift)
    var = jnp.maximum(fold(psumsq) * inv_n, jnp.float32(0.2))

    bias = -mean
    weight = -0.5 * jnp.log(var) + jnp.float32(math.log(init_scale))
    return weight, bias


@functools.partial(jax.jit, static_argnames=("tile_m",))
def actnorm_forward(x, weight, bias, *, tile_m=None):
    """y = (x + bias) * softplus(weight), broadcast over the last axis."""
    orig_shape = x.shape
    F = orig_shape[-1]
    out_dtype = x.dtype
    x2d = x.reshape(-1, F)                   # free reshape, native dtype
    M = x2d.shape[0]

    k = _pack_factor(F, M)
    Mp, Fp = M // k, k * F
    xp = x2d.reshape(Mp, Fp)                 # free reshape (no pad, no copy)

    vmem_cap = _vmem_capacity_bytes()
    tile_f = _choose_tile_f(Fp)
    tm = tile_m if tile_m is not None else _choose_tile_m(Mp, tile_f, vmem_cap)
    row_blocks = pl.cdiv(Mp, tm)
    lane_blocks = pl.cdiv(Fp, tile_f)

    # Elementwise math runs natively in the input dtype for f32/bf16 (no
    # per-vreg converts; Mosaic widens bf16 arithmetic itself on v5e);
    # anything else is promoted to f32.
    if out_dtype == jnp.float32 or out_dtype == jnp.bfloat16:
        compute_dtype = out_dtype
    else:
        compute_dtype = jnp.float32

    # Hoist softplus and the lane-packed parameter broadcast out of the kernel.
    scale = jnp.logaddexp(weight.astype(jnp.float32), jnp.float32(0.0))
    bias_f = bias.astype(jnp.float32)
    if k > 1:
        scale = jnp.tile(scale, k)
        bias_f = jnp.tile(bias_f, k)
    s_p = scale.reshape(1, Fp).astype(compute_dtype)
    b_p = bias_f.reshape(1, Fp).astype(compute_dtype)

    itemsize = x.dtype.itemsize
    yp = pl.pallas_call(
        _forward_kernel,
        out_shape=jax.ShapeDtypeStruct((Mp, Fp), out_dtype),
        grid_spec=pltpu.PrefetchScalarGridSpec(
            num_scalar_prefetch=0,
            grid=(row_blocks, lane_blocks),
            in_specs=[pl.BlockSpec((tm, tile_f), lambda i, j: (i, j)),
                      pl.BlockSpec((1, tile_f), lambda i, j: (0, j)),
                      pl.BlockSpec((1, tile_f), lambda i, j: (0, j))],
            out_specs=pl.BlockSpec((tm, tile_f), lambda i, j: (i, j)),
        ),
        compiler_params=_compiler_params(("parallel", "parallel"), vmem_cap),
        cost_estimate=pl.CostEstimate(
            flops=2 * Mp * Fp, transcendentals=0,
            bytes_accessed=2 * Mp * Fp * itemsize + 2 * Fp * 4),
    )(xp, b_p, s_p)

    return yp.reshape(orig_shape)            # free reshape back


class ActNormPallas:
    """JAX/Pallas port of the PyTorch ActNorm module (forward pass).

    Like the PyTorch module, the data-dependent init mutates Python-side
    state on the first call; do not wrap __call__ itself in jax.jit (the
    underlying entry points are already jitted).
    """

    def __init__(self, num_features, init_scale=1.0):
        self.num_features = num_features
        self.init_scale = init_scale
        self.initialized = False
        self.weight = jnp.zeros((num_features,), jnp.float32)
        self.bias = jnp.zeros((num_features,), jnp.float32)

    def __call__(self, x, *, tile_m=None):
        if not self.initialized:
            self.weight, self.bias = actnorm_init_params(
                x, init_scale=self.init_scale, tile_m=tile_m)
            self.initialized = True
        return actnorm_forward(x, self.weight, self.bias, tile_m=tile_m)


# ---------------------------------------------------------------------------
# Reference (pure JAX) for verification
# ---------------------------------------------------------------------------
def _reference(x, init_scale=1.0):
    F = x.shape[-1]
    x2d = x.reshape(-1, F).astype(jnp.float32)
    mean = jnp.mean(x2d, axis=0)
    var = jnp.mean((x2d - mean) ** 2, axis=0)
    var = jnp.maximum(var, 0.2)
    bias = -mean
    weight = -0.5 * jnp.log(var) + math.log(init_scale)
    sp = jnp.logaddexp(weight, 0.0)          # numerically-stable softplus
    return (x.astype(jnp.float32) + bias) * sp


def _check(x, tile_m=None, tol=2e-4):
    layer = ActNormPallas(num_features=x.shape[-1], init_scale=1.0)
    y = jax.block_until_ready(layer(x, tile_m=tile_m))
    y_ref = jax.block_until_ready(_reference(x))
    assert y.shape == x.shape
    assert y.dtype == x.dtype
    err = jnp.max(jnp.abs(y.astype(jnp.float32) - y_ref))
    assert err < tol, f"mismatch vs reference: max abs err = {err}"


if __name__ == "__main__":
    key = jax.random.PRNGKey(0)
    k1, k2, k3 = jax.random.split(key, 3)

    # Channels-last: batch=2, spatial=8x8, num_features=32 (lane-packed, k=4).
    x1 = jax.random.normal(k1, (2, 8, 8, 32), dtype=jnp.float32) * 2.0 + 0.5
    _check(x1)                               # default (single-block) path

    # Forced small row tiles: multi-block reduction, both core slots active.
    x2 = jax.random.normal(k2, (2, 8, 8, 32), dtype=jnp.float32) * 1.5 - 0.3
    _check(x2, tile_m=8)

    # Row count not divisible by the pack factor (k=1 fallback) plus a ragged
    # tail block (in-kernel row masking / discarded OOB writes).
    x3 = jax.random.normal(k3, (2, 5, 7, 32), dtype=jnp.float32) * 0.7 + 1.2
    _check(x3, tile_m=16)

    print("KERNEL_OK")
</pallas_src>

<mosaic_0001>
module attributes {stable_mosaic.version = 11 : i64} {
  func.func @kernel(%arg0: i32, %arg1: i32, %arg2: i32, %arg3: memref<32x128xf32, #tpu.memory_space<vmem>>, %arg4: memref<1x128xf32, #tpu.memory_space<vmem>>, %arg5: memref<8x128xf32, #tpu.memory_space<vmem>>, %arg6: memref<8x128xf32, #tpu.memory_space<vmem>>) attributes {dimension_semantics = [#tpu.dimension_semantics<parallel>, #tpu.dimension_semantics<parallel>, #tpu.dimension_semantics<arbitrary>], iteration_bounds = array<i64: 2, 1, 1>, scalar_prefetch = 0 : i64, scratch_operands = 0 : i64, tpu.core_type = #tpu.core_type<tc>, window_params = [{transform_indices = @transform_0, window_bounds = array<i64: 32, 128>}, {transform_indices = @transform_1, window_bounds = array<i64: 1, 128>}, {transform_indices = @transform_2, window_bounds = array<i64: 8, 128>}, {transform_indices = @transform_3, window_bounds = array<i64: 8, 128>}]} {
    %c0_i32 = arith.constant 0 : i32
    %0 = arith.cmpi eq, %arg2, %c0_i32 : i32
    %1 = arith.extui %0 : i1 to i32
    %c0_i32_0 = arith.constant 0 : i32
    %2 = arith.cmpi ne, %1, %c0_i32_0 : i32
    scf.if %2 {
      %cst_15 = arith.constant 0.000000e+00 : f32
      %29 = vector.broadcast %cst_15 : f32 to vector<8x128xf32>
      %c0_16 = arith.constant 0 : index
      %c0_17 = arith.constant 0 : index
      %30 = vector.load %arg5[%c0_16, %c0_17] : memref<8x128xf32, #tpu.memory_space<vmem>>, vector<8x128xf32>
      tpu.vector_store %arg5[%c0_16, %c0_17], %29 {strides = array<i32>} : memref<8x128xf32, #tpu.memory_space<vmem>>, vector<8x128xf32>,
      %cst_18 = arith.constant 0.000000e+00 : f32
      %31 = vector.broadcast %cst_18 : f32 to vector<8x128xf32>
      %c0_19 = arith.constant 0 : index
      %c0_20 = arith.constant 0 : index
      %32 = vector.load %arg6[%c0_19, %c0_20] : memref<8x128xf32, #tpu.memory_space<vmem>>, vector<8x128xf32>
      tpu.vector_store %arg6[%c0_19, %c0_20], %31 {strides = array<i32>} : memref<8x128xf32, #tpu.memory_space<vmem>>, vector<8x128xf32>,
    } else {
    }
    %c1_i32 = arith.constant 1 : i32
    %3 = arith.muli %arg0, %c1_i32 : i32
    %4 = arith.addi %3, %arg2 : i32
    %c32_i32 = arith.constant 32 : i32
    %5 = arith.muli %4, %c32_i32 : i32
    %c32_i32_1 = arith.constant 32 : i32
    %6 = arith.subi %c32_i32_1, %5 : i32
    %c0 = arith.constant 0 : index
    %c0_2 = arith.constant 0 : index
    %7 = vector.load %arg3[%c0, %c0_2] : memref<32x128xf32, #tpu.memory_space<vmem>>, vector<32x128xf32>
    %c0_3 = arith.constant 0 : index
    %c0_4 = arith.constant 0 : index
    %8 = vector.load %arg4[%c0_3, %c0_4] : memref<1x128xf32, #tpu.memory_space<vmem>>, vector<1x128xf32>
    %9 = vector.broadcast %8 : vector<1x128xf32> to vector<32x128xf32>
    %10 = arith.subf %7, %9 : vector<32x128xf32>
    %11 = tpu.iota {dimensions = array<i32: 0>} : vector<32x128xi32>
    %12 = vector.broadcast %6 : i32 to vector<32x128xi32>
    %13 = arith.cmpi slt, %11, %12 : vector<32x128xi32>
    %cst = arith.constant 0.000000e+00 : f32
    %14 = vector.broadcast %cst : f32 to vector<32x128xf32>
    %15 = arith.select %13, %10, %14 : vector<32x128xi1>, vector<32x128xf32>
    %c0_5 = arith.constant 0 : index
    %c0_6 = arith.constant 0 : index
    %16 = vector.load %arg5[%c0_5, %c0_6] : memref<8x128xf32, #tpu.memory_space<vmem>>, vector<8x128xf32>
    %cst_7 = arith.constant dense<0.000000e+00> : vector<128xf32>
    %17 = vector.multi_reduction <add>, %15, %cst_7 [0] : vector<32x128xf32> to vector<128xf32>
    %18 = vector.shape_cast %17 : vector<128xf32> to vector<1x128xf32>
    %19 = vector.broadcast %18 : vector<1x128xf32> to vector<8x128xf32>
    %20 = arith.addf %16, %19 : vector<8x128xf32>
    %c0_8 = arith.constant 0 : index
    %c0_9 = arith.constant 0 : index
    %21 = vector.load %arg5[%c0_8, %c0_9] : memref<8x128xf32, #tpu.memory_space<vmem>>, vector<8x128xf32>
    tpu.vector_store %arg5[%c0_8, %c0_9], %20 {strides = array<i32>} : memref<8x128xf32, #tpu.memory_space<vmem>>, vector<8x128xf32>,
    %c0_10 = arith.constant 0 : index
    %c0_11 = arith.constant 0 : index
    %22 = vector.load %arg6[%c0_10, %c0_11] : memref<8x128xf32, #tpu.memory_space<vmem>>, vector<8x128xf32>
    %23 = arith.mulf %15, %15 : vector<32x128xf32>
    %cst_12 = arith.constant dense<0.000000e+00> : vector<128xf32>
    %24 = vector.multi_reduction <add>, %23, %cst_12 [0] : vector<32x128xf32> to vector<128xf32>
    %25 = vector.shape_cast %24 : vector<128xf32> to vector<1x128xf32>
    %26 = vector.broadcast %25 : vector<1x128xf32> to vector<8x128xf32>
    %27 = arith.addf %22, %26 : vector<8x128xf32>
    %c0_13 = arith.constant 0 : index
    %c0_14 = arith.constant 0 : index
    %28 = vector.load %arg6[%c0_13, %c0_14] : memref<8x128xf32, #tpu.memory_space<vmem>>, vector<8x128xf32>
    tpu.vector_store %arg6[%c0_13, %c0_14], %27 {strides = array<i32>} : memref<8x128xf32, #tpu.memory_space<vmem>>, vector<8x128xf32>,
    return
  }
  func.func @transform_0(%arg0: i32, %arg1: i32, %arg2: i32) -> (i32, i32) {
    %c1_i32 = arith.constant 1 : i32
    %0 = arith.muli %arg0, %c1_i32 : i32
    %1 = arith.addi %0, %arg2 : i32
    %c0_i32 = arith.constant 0 : i32
    %2 = arith.minsi %1, %c0_i32 : i32
    %c0_i32_0 = arith.constant 0 : i32
    return %2, %arg1 : i32, i32
  }
  func.func @transform_1(%arg0: i32, %arg1: i32, %arg2: i32) -> (i32, i32) {
    %c0_i32 = arith.constant 0 : i32
    %c0_i32_0 = arith.constant 0 : i32
    return %c0_i32, %arg1 : i32, i32
  }
  func.func @transform_2(%arg0: i32, %arg1: i32, %arg2: i32) -> (i32, i32) {
    %c0_i32 = arith.constant 0 : i32
    return %arg0, %arg1 : i32, i32
  }
  func.func @transform_3(%arg0: i32, %arg1: i32, %arg2: i32) -> (i32, i32) {
    %c0_i32 = arith.constant 0 : i32
    return %arg0, %arg1 : i32, i32
  }
}

module attributes {stable_mosaic.version = 11 : i64} {
  func.func @kernel(%arg0: i32, %arg1: i32, %arg2: i32, %arg3: memref<32x128xf32, #tpu.memory_space<vmem>>, %arg4: memref<1x128xf32, #tpu.memory_space<vmem>>, %arg5: memref<8x128xf32, #tpu.memory_space<vmem>>, %arg6: memref<8x128xf32, #tpu.memory_space<vmem>>) attributes {dimension_semantics = [#tpu.dimension_semantics<parallel>, #tpu.dimension_semantics<parallel>, #tpu.dimension_semantics<arbitrary>], iteration_bounds = array<i64: 2, 1, 1>, scalar_prefetch = 0 : i64, scratch_operands = 0 : i64, tpu.core_type = #tpu.core_type<tc>, window_params = [{transform_indices = @transform_0, window_bounds = array<i64: 32, 128>}, {transform_indices = @transform_1, window_bounds = array<i64: 1, 128>}, {transform_indices = @transform_2, window_bounds = array<i64: 8, 128>}, {transform_indices = @transform_3, window_bounds = array<i64: 8, 128>}]} {
    %c0_i32 = arith.constant 0 : i32
    %0 = arith.cmpi eq, %arg2, %c0_i32 : i32
    %1 = arith.extui %0 : i1 to i32
    %c0_i32_0 = arith.constant 0 : i32
    %2 = arith.cmpi ne, %1, %c0_i32_0 : i32
    scf.if %2 {
      %cst_15 = arith.constant 0.000000e+00 : f32
      %29 = vector.broadcast %cst_15 : f32 to vector<8x128xf32>
      %c0_16 = arith.constant 0 : index
      %c0_17 = arith.constant 0 : index
      %30 = vector.load %arg5[%c0_16, %c0_17] : memref<8x128xf32, #tpu.memory_space<vmem>>, vector<8x128xf32>
      tpu.vector_store %arg5[%c0_16, %c0_17], %29 {strides = array<i32>} : memref<8x128xf32, #tpu.memory_space<vmem>>, vector<8x128xf32>,
      %cst_18 = arith.constant 0.000000e+00 : f32
      %31 = vector.broadcast %cst_18 : f32 to vector<8x128xf32>
      %c0_19 = arith.constant 0 : index
      %c0_20 = arith.constant 0 : index
      %32 = vector.load %arg6[%c0_19, %c0_20] : memref<8x128xf32, #tpu.memory_space<vmem>>, vector<8x128xf32>
      tpu.vector_store %arg6[%c0_19, %c0_20], %31 {strides = array<i32>} : memref<8x128xf32, #tpu.memory_space<vmem>>, vector<8x128xf32>,
    } else {
    }
    %c1_i32 = arith.constant 1 : i32
    %3 = arith.muli %arg0, %c1_i32 : i32
    %4 = arith.addi %3, %arg2 : i32
    %c32_i32 = arith.constant 32 : i32
    %5 = arith.muli %4, %c32_i32 : i32
    %c32_i32_1 = arith.constant 32 : i32
    %6 = arith.subi %c32_i32_1, %5 : i32
    %c0 = arith.constant 0 : index
    %c0_2 = arith.constant 0 : index
    %7 = vector.load %arg3[%c0, %c0_2] : memref<32x128xf32, #tpu.memory_space<vmem>>, vector<32x128xf32>
    %c0_3 = arith.constant 0 : index
    %c0_4 = arith.constant 0 : index
    %8 = vector.load %arg4[%c0_3, %c0_4] : memref<1x128xf32, #tpu.memory_space<vmem>>, vector<1x128xf32>
    %9 = vector.broadcast %8 : vector<1x128xf32> to vector<32x128xf32>
    %10 = arith.subf %7, %9 : vector<32x128xf32>
    %11 = tpu.iota {dimensions = array<i32: 0>} : vector<32x128xi32>
    %12 = vector.broadcast %6 : i32 to vector<32x128xi32>
    %13 = arith.cmpi slt, %11, %12 : vector<32x128xi32>
    %cst = arith.constant 0.000000e+00 : f32
    %14 = vector.broadcast %cst : f32 to vector<32x128xf32>
    %15 = arith.select %13, %10, %14 : vector<32x128xi1>, vector<32x128xf32>
    %c0_5 = arith.constant 0 : index
    %c0_6 = arith.constant 0 : index
    %16 = vector.load %arg5[%c0_5, %c0_6] : memref<8x128xf32, #tpu.memory_space<vmem>>, vector<8x128xf32>
    %cst_7 = arith.constant dense<0.000000e+00> : vector<128xf32>
    %17 = vector.multi_reduction <add>, %15, %cst_7 [0] : vector<32x128xf32> to vector<128xf32>
    %18 = vector.shape_cast %17 : vector<128xf32> to vector<1x128xf32>
    %19 = vector.broadcast %18 : vector<1x128xf32> to vector<8x128xf32>
    %20 = arith.addf %16, %19 : vector<8x128xf32>
    %c0_8 = arith.constant 0 : index
    %c0_9 = arith.constant 0 : index
    %21 = vector.load %arg5[%c0_8, %c0_9] : memref<8x128xf32, #tpu.memory_space<vmem>>, vector<8x128xf32>
    tpu.vector_store %arg5[%c0_8, %c0_9], %20 {strides = array<i32>} : memref<8x128xf32, #tpu.memory_space<vmem>>, vector<8x128xf32>,
    %c0_10 = arith.constant 0 : index
    %c0_11 = arith.constant 0 : index
    %22 = vector.load %arg6[%c0_10, %c0_11] : memref<8x128xf32, #tpu.memory_space<vmem>>, vector<8x128xf32>
    %23 = arith.mulf %15, %15 : vector<32x128xf32>
    %cst_12 = arith.constant dense<0.000000e+00> : vector<128xf32>
    %24 = vector.multi_reduction <add>, %23, %cst_12 [0] : vector<32x128xf32> to vector<128xf32>
    %25 = vector.shape_cast %24 : vector<128xf32> to vector<1x128xf32>
    %26 = vector.broadcast %25 : vector<1x128xf32> to vector<8x128xf32>
    %27 = arith.addf %22, %26 : vector<8x128xf32>
    %c0_13 = arith.constant 0 : index
    %c0_14 = arith.constant 0 : index
    %28 = vector.load %arg6[%c0_13, %c0_14] : memref<8x128xf32, #tpu.memory_space<vmem>>, vector<8x128xf32>
    tpu.vector_store %arg6[%c0_13, %c0_14], %27 {strides = array<i32>} : memref<8x128xf32, #tpu.memory_space<vmem>>, vector<8x128xf32>,
    return
  }
  func.func @transform_0(%arg0: i32, %arg1: i32, %arg2: i32) -> (i32, i32) {
    %c1_i32 = arith.constant 1 : i32
    %0 = arith.muli %arg0, %c1_i32 : i32
    %1 = arith.addi %0, %arg2 : i32
    %c0_i32 = arith.constant 0 : i32
    %2 = arith.minsi %1, %c0_i32 : i32
    %c0_i32_0 = arith.constant 0 : i32
    return %2, %arg1 : i32, i32
  }
  func.func @transform_1(%arg0: i32, %arg1: i32, %arg2: i32) -> (i32, i32) {
    %c0_i32 = arith.constant 0 : i32
    %c0_i32_0 = arith.constant 0 : i32
    return %c0_i32, %arg1 : i32, i32
  }
  func.func @transform_2(%arg0: i32, %arg1: i32, %arg2: i32) -> (i32, i32) {
    %c0_i32 = arith.constant 0 : i32
    return %arg0, %arg1 : i32, i32
  }
  func.func @transform_3(%arg0: i32, %arg1: i32, %arg2: i32) -> (i32, i32) {
    %c0_i32 = arith.constant 0 : i32
    return %arg0, %arg1 : i32, i32
  }
}

</mosaic_0001>

<bundles_post_ra>
// kernel: tile.9
= control target key start
LH: loop header
LB: loop body
LE: loop exit
PB: predicated region body
PF: predicated region fallthrough
CT: control target
= control target key end

     0   :  { %vm8_vm0 = vcmask 261120   ;;  %s40_s8 = smov 32   ;;  %s41_s9 = smov 64   ;;  %vm14_vm1 = vcmask 1048320   ;;  %vm20_vm2 = vcmask 785920   ;;  %vm26_vm3 = vcmask 523520   ;;  %s58_s0 = inlined_call_operand.vmem [shape: f32[4,32], index: 0, kind: input, shape index: {}]   ;;  %s59_s1 = inlined_call_operand.vmem [shape: f32[1,128], index: 1, kind: output, shape index: {}]  }
   0x1   :  { %v5_v0 = vld [vmem:[%s58_s0] sm:$0xf]  ;;  %s39_s0 = smov 96  }
   0x2   :  { %6 = vst [vmem:[#allocation1] sm:$0xf] %v5_v0 }
   0x9   :  { %v11_v1 = vld [vmem:[#allocation1 + $0x3] sm:$0x1]   ;;  %v23_v2 = vld [vmem:[#allocation1 + $0x1] sm:$0x1]   ;;  %v7_v3 = vld [vmem:[#allocation1] sm:$0x1]  }
   0xa   :  { %12 = vrot.lane.b32.xlu0 %v11_v1, %s39_s0  ;;  %24 = vrot.lane.b32.xlu1 %v23_v2, %s40_s8  ;;  %v17_v4 = vld [vmem:[#allocation1 + $0x2] sm:$0x1]   ;;  %9 = vst.msk [vmem:[#allocation0] sm:$0x1] %vm8_vm0, %v7_v3  }
   0xe   :  { %18 = vrot.lane.b32.xlu0 %v17_v4, %s41_s9 }
  0x7c   :  { %v13_v5 = vpop.permute.xlu0 %12   ;;  %v25_v6 = vpop.permute.xlu1 %24  }
  0x7d   :  { %15 = vst.msk [vmem:[#allocation0] sm:$0x1] %vm14_vm1, %v13_v5  }
  0x80   :  { %v19_v7 = vpop.permute.xlu0 %18  }
  0x81   :  { %21 = vst.msk [vmem:[#allocation0] sm:$0x1] %vm20_vm2, %v19_v7  }
  0x82   :  { %27 = vst.msk [vmem:[#allocation0] sm:$0x1] %vm26_vm3, %v25_v6  }
  0x89   :  { %v32_v8 = vld [vmem:[#allocation0] sm:$0x1] }
  0x8a   :  { %35 = vst [vmem:[%s59_s1] sm:$0x1] %v32_v8 }

// kernel: tile.8
= control target key start
LH: loop header
LB: loop body
LE: loop exit
PB: predicated region body
PF: predicated region fallthrough
CT: control target
= control target key end

     0   :  { %s22_s0 = inlined_call_operand.vmem [shape: f32[32], index: 0, kind: input, shape index: {}]   ;;  %s23_s1 = inlined_call_operand.vmem [shape: f32[4,32], index: 1, kind: output, shape index: {}]  }
   0x1   :  { %v4_v0 = vld [vmem:[%s22_s0] ss:$0 sm:$0xff] }
   0x2   :  { %5 = vst [vmem:[%s23_s1] sm:$0xf] %v4_v0 }

// kernel: actnorm_init_params.2
= control target key start
LH: loop header
LB: loop body
LE: loop exit
PB: predicated region body
PF: predicated region fallthrough
CT: control target
= control target key end

     0   :  { %9 = vsyncpa [#allocation3], 0  ;;  %s750_s0 = inlined_call_operand.vmem [shape: f32[32,128], index: 0, kind: input, shape index: {}]   ;;  %s751_s1 = inlined_call_operand.vmem [shape: f32[1,128], index: 1, kind: input, shape index: {}]   ;;  %s752_s2 = inlined_call_operand.vmem [shape: f32[16,128], index: 2, kind: output, shape index: {0}]   ;;  %s753_s3 = inlined_call_operand.hbm [shape: f32[16,128], index: 3, kind: output, shape index: {1}]  }
   0x1   :  { %11 = vsyncpa [#allocation3 + $0x1], 0  ;;  %s636_s12 = smov 0   ;;  %s638_s13 = smov 0  }
   0x2   :  { %s640_s14 = smov 0   ;;  %s642_s15 = smov 0  }
   0x3   :  { %s644_s16 = smov 0   ;;  %s646_s17 = smov 0  }
   0x4 LB: > { %s465_s18 = sadd.s32 4294967295, %s613_s17   ;;  %s466_s19 = sadd.s32 4294967294, %s613_s17   ;;  %s613_s17 = sphi %s646_s17, %s17_s17   ;;  %s609_s16 = sphi %s644_s16, %s760_s16   ;;  %s605_s15 = sphi %s642_s15, %s759_s15   ;;  %s601_s14 = sphi %s640_s14, %s758_s14   ;;  %s597_s13 = sphi %s638_s13, %s757_s13   ;;  %s593_s12 = sphi %s636_s12, %s756_s12  }
   0x5   : > { %s36_s20 = sadd.s32 1, %s609_s16  ;;  %s133_s21 = sadd.s32 1, %s601_s14 }
   0x6   : > { %p38_p0 = scmp.ge.s32.totalorder %s36_s20, 2  ;;  %p143_p1 = scmp.ne.s32.totalorder %s601_s14, %s597_s13 }
   0x7   : > { %p144_p2 = scmp.eq.s32.totalorder %s465_s18, 1  ;;  %p149_p3 = scmp.ne.s32.totalorder %s597_s13, %s593_s12 }
   0x8   : > { %s762_s20 = smov (%p38_p0, %s36_s20), 0  ;;  %p150_p5 = scmp.eq.s32.totalorder %s466_s19, 1 }
   0x9   : > { %p676_p4 = por %p144_p2, %p143_p1  ;;  %s128_s23 = ssub.s32 %s609_s16, %s762_s20 }
   0xa   : > { %p470_p6 = scmp.ge.s32.totalorder %s613_s17, 1  ;;  %p131_p7 = scmp.eq.s32.totalorder %s128_s23, 0 }
   0xb   : > { %p683_p8 = por %p150_p5, %p149_p3  ;;  %p192_p9 = scmp.lt.s32.totalorder %s613_s17, 3 }
   0xc   : > { %s689_s25 = scalar_select %p131_p7, %s601_s14, %s133_s21  }
   0xd   : > { %p193_p10 = pnand %p470_p6, %p192_p9 }
   0xe   : > { %p233_p11 = scmp.lt.s32.totalorder (!%p193_p10), %s605_s15, 0  ;;  %s475_s26 = sshll.u32 (!%p193_p10), %s605_s15, 5 }
   0xf   : > { %196 = sbr.rel (%p193_p10) target bundleno = 65 (0x41), region = 28  ;;  %s265_s29 = ssub.s32 (!%p193_p10), 32, %s475_s26 }
  0x10   : > { %s229_s9 = sand.u32 (!%p193_p10), 1, %s597_s13   ;;  %p250_p13 = scmp.lt.s32.totalorder (!%p193_p10), %s605_s15, 1 }
  0x11   : > { %s471_s10 = sshll.u32 (!%p193_p10), %s229_s9, 3  ;;  %s478_s19 = sshll.u32 (!%p193_p10), %s605_s15, 7 }
  0x12   : > { %s231_s21 = scalar_lea.vmem (!%p193_p10), [#allocation2], %s471_s10  ;;  %s710_s4 = scalar_lea.hbm (!%p193_p10), %s753_s3, %s478_s19 }
  0x13   : > { %s348_s23 = sshll.u32 (!%p193_p10), %s231_s21, 4  ;;  %s331_s5 = scalar_lea.sflag (!%p193_p10), [#allocation3], %s229_s9  ;;  %s349_s23 = int_to_ptr.vmem [resolvable:$true] %s348_s23 }
  0x14   : > { %v281_v0 = vlaneseq  ;;  %s234_s27 = scalar_select %p233_p11, %s605_s15, 0  ;;  %v286_v5 = vstv %s265_s29  ;;  %v476_v6 = vld [vmem:[%s751_s1] ss:$0 sm:$0xff] }
  0x15   : > { %s251_s11 = scalar_select %p250_p13, %s605_s15, 1 }
  0x16   : > { %v282_v1 = vshrl.u32 %v281_v0, 7  ;;  %s472_s28 = sshll.u32 %s234_s27, 2  ;;  %s537_s6 = scalar_lea.vmem %s349_s23, 128 }
  0x17   : > { %p236_p12 = scmp.lt.s32.totalorder %s472_s28, 3  ;;  %s474_s18 = sshll.u32 %s251_s11, 3 }
  0x18   : > { %v283_v2 = vadd.s32 8, %v282_v1  ;;  %v284_v3 = vadd.s32 16, %v282_v1  ;;  %v285_v4 = vadd.s32 24, %v282_v1  ;;  %vm287_vm0 = vcmp.lt.s32.totalorder %v282_v1, %v286_v5  ;;  %p538_p0 = scmp.ne.s32.totalorder %s349_s23, %s537_s6  ;;  %s615_s15 = smov [#allocation2]  }
  0x19   : > { %s764_s28 = smov (!%p236_p12, %s472_s28), 3  ;;  %s541_s7 = sshll.u32 %s615_s15, 4  ;;  %s542_s7 = int_to_ptr.vmem [resolvable:$false] %s541_s7 }
  0x1a   : > { %s473_s30 = sshll.u32 %s764_s28, 3  ;;  %vm288_vm1 = vcmp.lt.s32.totalorder %v283_v2, %v286_v5  ;;  %vm289_vm2 = vcmp.lt.s32.totalorder %v284_v3, %v286_v5  ;;  %vm290_vm3 = vcmp.lt.s32.totalorder %v285_v4, %v286_v5  ;;  %s256_s28 = scalar_lea.vmem %s752_s2, %s474_s18 }
  0x1b   : > { %s242_s8 = scalar_lea.vmem %s750_s0, %s473_s30  ;;  %p539_p1 = pnand %p538_p0, %p676_p4 }
  0x1c   : > { %v266_v7 = vld [vmem:[%s242_s8] sm:$0xff]  ;;  %v267_v8 = vld [vmem:[%s242_s8 + $0x8] sm:$0xff]  ;;  %v268_v9 = vld [vmem:[%s242_s8 + $0x10] sm:$0xff]  ;;  %p544_p3 = scmp.lt.s32.totalorder %s349_s23, %s542_s7 }
  0x1d   : > { %v269_v10 = vld [vmem:[%s242_s8 + $0x18] sm:$0xff]  ;;  %v277_v11 = vsub.f32 %v266_v7, %v476_v6  ;;  %v278_v12 = vsub.f32 %v267_v8, %v476_v6  ;;  %v279_v13 = vsub.f32 %v268_v9, %v476_v6  ;;  %p540_p2 = pneg %p539_p1  ;;  %s543_s8 = scalar_lea.vmem %s542_s7, 256 }
  0x1e   : > { %v280_v14 = vsub.f32 %v269_v10, %v476_v6  ;;  %p545_p5 = scmp.lt.s32.totalorder %s543_s8, %s537_s6 }
  0x1f   : > { %v291_v15 = vsel %vm287_vm0, %v277_v11, 0.0  ;;  %v292_v16 = vsel %vm288_vm1, %v278_v12, 0.0  ;;  %v293_v17 = vsel %vm289_vm2, %v279_v13, 0.0 }
  0x20   : > { %v294_v18 = vsel %vm290_vm3, %v280_v14, 0.0  ;;  %v308_v19 = vmul.f32 %v291_v15, %v291_v15  ;;  %v309_v20 = vmul.f32 %v292_v16, %v292_v16  ;;  %v310_v21 = vmul.f32 %v293_v17, %v293_v17  ;;  %p546_p6 = por %p545_p5, %p544_p3 }
  0x21   : > { %v296_v22 = vadd.f32 %v292_v16, %v291_v15  ;;  %v311_v23 = vmul.f32 %v294_v18, %v294_v18 }
  0x22   : > { %v312_v24 = vadd.f32 %v309_v20, %v308_v19  ;;  %p547_p7 = pnand %p546_p6, %p540_p2 }
  0x23   : > { %v297_v25 = vadd.f32 %v296_v22, %v293_v17 }
  0x24   : > { %v313_v26 = vadd.f32 %v312_v24, %v310_v21 }
  0x25   : > { %v298_v27 = vadd.f32 %v297_v25, %v294_v18 }
  0x26   : > { %v314_v28 = vadd.f32 %v313_v26, %v311_v23 }
  0x27   : > { %v299_v29 = vrot.slane %v298_v27, 4 }
  0x28   : > { %v315_v30 = vrot.slane %v314_v28, 4 }
  0x29   : > { %v300_v31 = vadd.f32 %v299_v29, %v298_v27 }
  0x2a   : > { %v316_v32 = vadd.f32 %v315_v30, %v314_v28 }
  0x2b   : > { %v301_v33 = vrot.slane %v300_v31, 2 }
  0x2c   : > { %v317_v34 = vrot.slane %v316_v32, 2 }
  0x2d   : > { %v302_v35 = vadd.f32 %v301_v33, %v300_v31 }
  0x2e   : > { %v318_v36 = vadd.f32 %v317_v34, %v316_v32 }
  0x2f   : > { %v303_v37 = vrot.slane %v302_v35, 1 }
  0x30   : > { %v319_v38 = vrot.slane %v318_v36, 1 }
  0x31   : > { %v304_v39 = vadd.f32 %v303_v37, %v302_v35 }
  0x32   : > { %v320_v40 = vadd.f32 %v319_v38, %v318_v36 }
  0x33   : > { %306 = vst [vmem:[%s256_s28] sm:$0xff] %v304_v39 }
  0x34   : > { %322 = vst [vmem:[%s231_s21] sm:$0xff] %v320_v40 }
  0x35   : > { %550 = shalt.err (!%p547_p7)
}
  0x36   : > { %s551_s10 = scalar_lea.hbm %s710_s4, 128  ;;  %s555_s18 = scalar_lea.hbm %s753_s3, 256 }
  0x37   : > { %p552_p9 = scmp.ne.s32.totalorder %s710_s4, %s551_s10  ;;  %p556_p12 = scmp.lt.s32.totalorder %s710_s4, %s753_s3 }
  0x38   : > { %p557_p13 = scmp.lt.s32.totalorder %s555_s18, %s551_s10 }
  0x39   : > { %p553_p10 = pnand %p552_p9, %p676_p4 }
  0x3a   : > { %p558_p0 = por %p557_p13, %p556_p12 }
  0x3b   : > { %p554_p11 = pneg %p553_p10 }
  0x3d   : > { %p559_p1 = pnand %p558_p0, %p554_p11 }
  0x3f   : > { %562 = shalt.err (!%p559_p1)
}
  0x40   : > { %481 = dma.vmem_to_hbm [thread:$0]  (%p676_p4), %s349_s23, 128, %s710_s4, %s331_s5  }
  0x41 PF: > { %p487_p2 = scmp.ge.s32.totalorder %s613_s17, 2  ;;  %s370_s26 = sand.u32 1, %s593_s12  }
  0x42   : > { %s371_s27 = scalar_lea.sflag [#allocation3], %s370_s26 }
  0x43   : > { %p484_p3 = pnand %p487_p2, %p683_p8 }
  0x45   : > { %p485_p5 = pneg %p484_p3 }
  0x47   : > { %588 = dma.done.wait (%p485_p5), %s371_s27, 128  }
  0x48   : > { %590 = vsyncadd (%p485_p5), %s371_s27, 4294967168  ;;  %s17_s17 = sadd.s32 1, %s613_s17   ;;  %s756_s12 = smov %s597_s13 }
  0x49   : > { %p14_p6 = scmp.ge.s32.totalorder %s17_s17, 4   ;;  %s757_s13 = smov %s601_s14 }
  0x4a   : > { %s758_s14 = smov %s689_s25  ;;  %s759_s15 = smov %s609_s16 }
  0x4b   : > { %s760_s16 = smov %s762_s20  ;;  %16 = sbr.rel (!%p14_p6) target bundleno = 4 (0x4), region = 82 }
  0x50   :  { %376 = vsyncpa [#allocation3], 1 }
  0x51   :  { %378 = vsyncpa [#allocation3 + $0x1], 1 }

// kernel: actnorm_init_params.3
= control target key start
LH: loop header
LB: loop body
LE: loop exit
PB: predicated region body
PF: predicated region fallthrough
CT: control target
= control target key end

     0   :  { %9 = vsyncpa [#allocation3], 0  ;;  %s750_s0 = inlined_call_operand.vmem [shape: f32[32,128], index: 0, kind: input, shape index: {}]   ;;  %s751_s1 = inlined_call_operand.vmem [shape: f32[1,128], index: 1, kind: input, shape index: {}]   ;;  %s752_s2 = inlined_call_operand.hbm [shape: f32[16,128], index: 2, kind: output, shape index: {0}]   ;;  %s753_s3 = inlined_call_operand.vmem [shape: f32[16,128], index: 3, kind: output, shape index: {1}]  }
   0x1   :  { %11 = vsyncpa [#allocation3 + $0x1], 0  ;;  %s636_s12 = smov 0   ;;  %s638_s13 = smov 0  }
   0x2   :  { %s640_s14 = smov 0   ;;  %s642_s15 = smov 0  }
   0x3   :  { %s644_s16 = smov 0   ;;  %s646_s17 = smov 0  }
   0x4 LB: > { %s465_s18 = sadd.s32 4294967295, %s613_s17   ;;  %s466_s19 = sadd.s32 4294967294, %s613_s17   ;;  %s613_s17 = sphi %s646_s17, %s17_s17   ;;  %s609_s16 = sphi %s644_s16, %s760_s16   ;;  %s605_s15 = sphi %s642_s15, %s759_s15   ;;  %s601_s14 = sphi %s640_s14, %s758_s14   ;;  %s597_s13 = sphi %s638_s13, %s757_s13   ;;  %s593_s12 = sphi %s636_s12, %s756_s12  }
   0x5   : > { %s36_s20 = sadd.s32 1, %s609_s16  ;;  %s105_s21 = sadd.s32 1, %s601_s14 }
   0x6   : > { %p38_p0 = scmp.ge.s32.totalorder %s36_s20, 2  ;;  %p115_p1 = scmp.ne.s32.totalorder %s601_s14, %s597_s13 }
   0x7   : > { %p116_p2 = scmp.eq.s32.totalorder %s465_s18, 1  ;;  %p121_p3 = scmp.ne.s32.totalorder %s597_s13, %s593_s12 }
   0x8   : > { %s762_s20 = smov (%p38_p0, %s36_s20), 0  ;;  %p122_p5 = scmp.eq.s32.totalorder %s466_s19, 1 }
   0x9   : > { %p676_p4 = por %p116_p2, %p115_p1  ;;  %s100_s23 = ssub.s32 %s609_s16, %s762_s20 }
   0xa   : > { %p470_p6 = scmp.ge.s32.totalorder %s613_s17, 1  ;;  %p103_p7 = scmp.eq.s32.totalorder %s100_s23, 0 }
   0xb   : > { %p683_p8 = por %p122_p5, %p121_p3  ;;  %p192_p9 = scmp.lt.s32.totalorder %s613_s17, 3 }
   0xc   : > { %s689_s25 = scalar_select %p103_p7, %s601_s14, %s105_s21  }
   0xd   : > { %p193_p10 = pnand %p470_p6, %p192_p9 }
   0xe   : > { %p233_p11 = scmp.lt.s32.totalorder (!%p193_p10), %s605_s15, 0  ;;  %s475_s26 = sshll.u32 (!%p193_p10), %s605_s15, 5 }
   0xf   : > { %196 = sbr.rel (%p193_p10) target bundleno = 63 (0x3f), region = 28  ;;  %s265_s29 = ssub.s32 (!%p193_p10), 32, %s475_s26 }
  0x10   : > { %s220_s9 = sand.u32 (!%p193_p10), 1, %s597_s13   ;;  %p250_p13 = scmp.lt.s32.totalorder (!%p193_p10), %s605_s15, 1 }
  0x11   : > { %s471_s10 = sshll.u32 (!%p193_p10), %s220_s9, 3  ;;  %s478_s18 = sshll.u32 (!%p193_p10), %s605_s15, 7 }
  0x12   : > { %s222_s19 = scalar_lea.vmem (!%p193_p10), [#allocation2], %s471_s10  ;;  %s324_s5 = scalar_lea.sflag (!%p193_p10), [#allocation3], %s220_s9 }
  0x13   : > { %s345_s21 = sshll.u32 (!%p193_p10), %s222_s19, 4  ;;  %s346_s21 = int_to_ptr.vmem [resolvable:$true] %s345_s21 }
  0x14   : > { %v281_v0 = vlaneseq  ;;  %s234_s27 = scalar_select %p233_p11, %s605_s15, 0  ;;  %v286_v5 = vstv %s265_s29  ;;  %v476_v6 = vld [vmem:[%s751_s1] ss:$0 sm:$0xff] }
  0x15   : > { %s251_s11 = scalar_select %p250_p13, %s605_s15, 1 }
  0x16   : > { %v282_v1 = vshrl.u32 %v281_v0, 7  ;;  %s472_s28 = sshll.u32 %s234_s27, 2  ;;  %s537_s6 = scalar_lea.vmem %s346_s21, 128 }
  0x17   : > { %p236_p12 = scmp.lt.s32.totalorder %s472_s28, 3  ;;  %s474_s23 = sshll.u32 %s251_s11, 3 }
  0x18   : > { %v283_v2 = vadd.s32 8, %v282_v1  ;;  %v284_v3 = vadd.s32 16, %v282_v1  ;;  %v285_v4 = vadd.s32 24, %v282_v1  ;;  %vm287_vm0 = vcmp.lt.s32.totalorder %v282_v1, %v286_v5  ;;  %s256_s4 = scalar_lea.vmem %s753_s3, %s474_s23  ;;  %p538_p0 = scmp.ne.s32.totalorder %s346_s21, %s537_s6 }
  0x19   : > { %s764_s28 = smov (!%p236_p12, %s472_s28), 3  ;;  %s615_s15 = smov [#allocation2]  }
  0x1a   : > { %s473_s30 = sshll.u32 %s764_s28, 3  ;;  %vm288_vm1 = vcmp.lt.s32.totalorder %v283_v2, %v286_v5  ;;  %vm289_vm2 = vcmp.lt.s32.totalorder %v284_v3, %v286_v5  ;;  %vm290_vm3 = vcmp.lt.s32.totalorder %v285_v4, %v286_v5  ;;  %s707_s28 = scalar_lea.hbm %s752_s2, %s478_s18 }
  0x1b   : > { %s242_s8 = scalar_lea.vmem %s750_s0, %s473_s30  ;;  %p539_p1 = pnand %p538_p0, %p676_p4 }
  0x1c   : > { %v266_v7 = vld [vmem:[%s242_s8] sm:$0xff]  ;;  %v267_v8 = vld [vmem:[%s242_s8 + $0x8] sm:$0xff]  ;;  %v268_v9 = vld [vmem:[%s242_s8 + $0x10] sm:$0xff]  ;;  %s541_s7 = sshll.u32 %s615_s15, 4  ;;  %s542_s7 = int_to_ptr.vmem [resolvable:$false] %s541_s7 }
  0x1d   : > { %v269_v10 = vld [vmem:[%s242_s8 + $0x18] sm:$0xff]  ;;  %v277_v11 = vsub.f32 %v266_v7, %v476_v6  ;;  %v278_v12 = vsub.f32 %v267_v8, %v476_v6  ;;  %v279_v13 = vsub.f32 %v268_v9, %v476_v6  ;;  %p540_p2 = pneg %p539_p1  ;;  %s543_s8 = scalar_lea.vmem %s542_s7, 256 }
  0x1e   : > { %v280_v14 = vsub.f32 %v269_v10, %v476_v6  ;;  %p544_p3 = scmp.lt.s32.totalorder %s346_s21, %s542_s7  ;;  %p545_p5 = scmp.lt.s32.totalorder %s543_s8, %s537_s6 }
  0x1f   : > { %v291_v15 = vsel %vm287_vm0, %v277_v11, 0.0  ;;  %v292_v16 = vsel %vm288_vm1, %v278_v12, 0.0  ;;  %v293_v17 = vsel %vm289_vm2, %v279_v13, 0.0 }
  0x20   : > { %v294_v18 = vsel %vm290_vm3, %v280_v14, 0.0  ;;  %v296_v19 = vadd.f32 %v292_v16, %v291_v15  ;;  %v308_v20 = vmul.f32 %v291_v15, %v291_v15  ;;  %v309_v21 = vmul.f32 %v292_v16, %v292_v16  ;;  %p546_p6 = por %p545_p5, %p544_p3 }
  0x21   : > { %v310_v22 = vmul.f32 %v293_v17, %v293_v17  ;;  %v311_v24 = vmul.f32 %v294_v18, %v294_v18 }
  0x22   : > { %v297_v23 = vadd.f32 %v296_v19, %v293_v17  ;;  %v312_v25 = vadd.f32 %v309_v21, %v308_v20  ;;  %p547_p7 = pnand %p546_p6, %p540_p2 }
  0x24   : > { %v298_v26 = vadd.f32 %v297_v23, %v294_v18  ;;  %v313_v27 = vadd.f32 %v312_v25, %v310_v22 }
  0x26   : > { %v299_v28 = vrot.slane %v298_v26, 4  ;;  %v314_v29 = vadd.f32 %v313_v27, %v311_v24 }
  0x28   : > { %v300_v30 = vadd.f32 %v299_v28, %v298_v26  ;;  %v315_v31 = vrot.slane %v314_v29, 4 }
  0x2a   : > { %v301_v32 = vrot.slane %v300_v30, 2  ;;  %v316_v33 = vadd.f32 %v315_v31, %v314_v29 }
  0x2c   : > { %v302_v34 = vadd.f32 %v301_v32, %v300_v30  ;;  %v317_v35 = vrot.slane %v316_v33, 2 }
  0x2e   : > { %v303_v36 = vrot.slane %v302_v34, 1  ;;  %v318_v37 = vadd.f32 %v317_v35, %v316_v33 }
  0x30   : > { %v304_v38 = vadd.f32 %v303_v36, %v302_v34  ;;  %v319_v39 = vrot.slane %v318_v37, 1 }
  0x32   : > { %v320_v40 = vadd.f32 %v319_v39, %v318_v37  ;;  %306 = vst [vmem:[%s222_s19] sm:$0xff] %v304_v38 }
  0x33   : > { %550 = shalt.err (!%p547_p7)
}
  0x34   : > { %s551_s10 = scalar_lea.hbm %s707_s28, 128  ;;  %s555_s18 = scalar_lea.hbm %s752_s2, 256 }
  0x35   : > { %p552_p9 = scmp.ne.s32.totalorder %s707_s28, %s551_s10  ;;  %p556_p12 = scmp.lt.s32.totalorder %s707_s28, %s752_s2 }
  0x36   : > { %p557_p13 = scmp.lt.s32.totalorder %s555_s18, %s551_s10 }
  0x37   : > { %p553_p10 = pnand %p552_p9, %p676_p4 }
  0x38   : > { %p558_p0 = por %p557_p13, %p556_p12 }
  0x39   : > { %p554_p11 = pneg %p553_p10 }
  0x3b   : > { %p559_p1 = pnand %p558_p0, %p554_p11 }
  0x3d   : > { %562 = shalt.err (!%p559_p1)
}
  0x3e   : > { %481 = dma.vmem_to_hbm [thread:$0]  (%p676_p4), %s346_s21, 128, %s707_s28, %s324_s5   ;;  %322 = vst [vmem:[%s256_s4] sm:$0xff] %v320_v40 }
  0x3f PF: > { %p487_p2 = scmp.ge.s32.totalorder %s613_s17, 2  ;;  %s360_s26 = sand.u32 1, %s593_s12  }
  0x40   : > { %s361_s27 = scalar_lea.sflag [#allocation3], %s360_s26 }
  0x41   : > { %p484_p3 = pnand %p487_p2, %p683_p8 }
  0x43   : > { %p485_p5 = pneg %p484_p3 }
  0x45   : > { %588 = dma.done.wait (%p485_p5), %s361_s27, 128  }
  0x46   : > { %590 = vsyncadd (%p485_p5), %s361_s27, 4294967168  ;;  %s17_s17 = sadd.s32 1, %s613_s17   ;;  %s756_s12 = smov %s597_s13 }
  0x47   : > { %p14_p6 = scmp.ge.s32.totalorder %s17_s17, 4   ;;  %s757_s13 = smov %s601_s14 }
  0x48   : > { %s758_s14 = smov %s689_s25  ;;  %s759_s15 = smov %s609_s16 }
  0x49   : > { %s760_s16 = smov %s762_s20  ;;  %16 = sbr.rel (!%p14_p6) target bundleno = 4 (0x4), region = 82 }
  0x4e   :  { %376 = vsyncpa [#allocation3], 1 }
  0x4f   :  { %378 = vsyncpa [#allocation3 + $0x1], 1 }

</bundles_post_ra>
